<compile_context>
chip_gen: v6e
topology: v6e:2x2x1
jax: 0.10.0
libtpu: 0.0.40
codegen_flags: <defaults>
</compile_context>

<pallas_src>
import functools

import jax
import jax.numpy as jnp
from jax import lax
from jax.experimental import pallas as pl
from jax.experimental.pallas import tpu as pltpu


# ----------------------------------------------------------------------------
# Generation-aware VMEM budgeting.
# ----------------------------------------------------------------------------
def _vmem_capacity_bytes():
    try:
        return int(pltpu.get_tpu_info().vmem_capacity_bytes)
    except Exception:
        return 64 * 1024 * 1024   # conservative fallback (v7x physical per-TC VMEM)


def _l2_normalize(v, eps=1e-12):
    ss = jnp.sum(v * v, axis=-1, keepdims=True)
    return v * lax.rsqrt(jnp.maximum(ss, jnp.float32(eps)))


# ----------------------------------------------------------------------------
# Similarity kernel: per (batch-tile, seq-chunk) step
#   accumulate sum(seq chunk) -> on last chunk: mean -> l2-normalize -> key dot.
# ----------------------------------------------------------------------------
def _similarity_kernel(x_ref, knorm_ref, sim_ref, xnorm_ref, acc_ref,
                       *, seq_len, seq_block, mask_seq):
    # x_ref:     (TB, TS, D)  streamed batch/seq tile of x_embed
    # knorm_ref: (P, D)       pre-normalized keys, resident across the grid
    # sim_ref:   (TB, P)      similarity (already transposed vs. the torch matmul)
    # xnorm_ref: (TB, D)      l2-normalized mean embedding
    # acc_ref:   (TB, D)      f32 running sum over the sequence
    j = pl.program_id(1)

    @pl.when(j == 0)
    def _():
        acc_ref[...] = jnp.zeros_like(acc_ref)

    x = x_ref[...]                                                   # (TB, TS, D)
    if mask_seq:
        # Last sequence chunk may be partial: zero out padded rows so they do
        # not pollute the running sum.
        pos = j * seq_block + lax.broadcasted_iota(jnp.int32, x.shape, 1)
        x = jnp.where(pos < seq_len, x, jnp.float32(0.0))
    # TODO(synk): on v5e this sublane reduction could be pushed to the MXU by
    # contracting TS against a ones vector; on v6e/v7x it hides under the x DMA.
    acc_ref[...] += jnp.sum(x, axis=1)                               # (TB, D)

    @pl.when(j == pl.num_programs(1) - 1)
    def _():
        eps = jnp.float32(1e-12)
        x_mean = acc_ref[...] * jnp.float32(1.0 / seq_len)           # (TB, D)
        x_sq = jnp.sum(x_mean * x_mean, axis=-1, keepdims=True)      # (TB, 1)
        x_norm = x_mean * lax.rsqrt(jnp.maximum(x_sq, eps))          # (TB, D)
        # Contract last dims of both operands: no explicit key transpose.
        sim_ref[...] = lax.dot_general(
            x_norm, knorm_ref[...],
            dimension_numbers=(((1,), (1,)), ((), ())),
            preferred_element_type=jnp.float32)                      # (TB, P)
        xnorm_ref[...] = x_norm


def _choose_tiles(B, S, D, slab_budget_bytes):
    """Pick (batch_tile, seq_tile) so the double-buffered x_embed slab stays in
    budget, the batch grid has >= 2 steps when B >= 16 (v7x megacore), and the
    output writes stay sublane-aligned."""
    bytes_per = 4  # f32

    # Batch tile.
    if B <= 8:
        tb = B
    else:
        tb = min(B, 256)
        if B >= 16:
            tb = min(tb, B // 2)              # guarantee >= 2 batch grid steps
        tb = max(8, (tb // 8) * 8)
        while B % tb != 0 and tb > 8:         # prefer a divisor (no partial tile)
            tb -= 8

    # Sequence tile: largest (multiple of 8 or == S) keeping 2*tb*ts*D*4 in budget.
    def slab(tb_, ts_):
        return 2 * tb_ * ts_ * D * bytes_per

    ts = S
    if slab(tb, ts) > slab_budget_bytes:
        ts = slab_budget_bytes // (2 * max(tb, 1) * D * bytes_per)
        ts = max(8, (ts // 8) * 8)
        ts = min(ts, S)
        if slab(tb, ts) > slab_budget_bytes and tb > 8:
            tb = slab_budget_bytes // (2 * ts * D * bytes_per)
            tb = max(8, (tb // 8) * 8)
            tb = min(tb, B)
    return tb, ts


def _similarity_call(x_embed, prompt_key_norm):
    B, S, D = x_embed.shape
    P, _ = prompt_key_norm.shape

    cap = _vmem_capacity_bytes()
    # ~60% of physical VMEM for the double-buffered x slab; scoped limit at 90%.
    # (=> ~76/115 MiB on v5e/v6e's 128 MiB, ~38/57 MiB on v7x's 64 MiB.)
    tb, ts = _choose_tiles(B, S, D, int(cap * 0.6))
    grid = (pl.cdiv(B, tb), pl.cdiv(S, ts))

    kernel = functools.partial(
        _similarity_kernel, seq_len=S, seq_block=ts, mask_seq=(S % ts != 0))

    # TODO(synk): streaming x_embed as bf16 would ~halve the binding HBM traffic;
    # kept f32 here to match the PyTorch module's dtype exactly.
    return pl.pallas_call(
        kernel,
        out_shape=(
            jax.ShapeDtypeStruct((B, P), jnp.float32),
            jax.ShapeDtypeStruct((B, D), jnp.float32),
        ),
        grid_spec=pltpu.PrefetchScalarGridSpec(
            num_scalar_prefetch=0,
            grid=grid,
            in_specs=[
                pl.BlockSpec((tb, ts, D), lambda i, j: (i, j, 0)),   # streamed x
                pl.BlockSpec((P, D), lambda i, j: (0, 0)),           # resident keys
            ],
            out_specs=(
                pl.BlockSpec((tb, P), lambda i, j: (i, 0)),
                pl.BlockSpec((tb, D), lambda i, j: (i, 0)),
            ),
            scratch_shapes=[pltpu.VMEM((tb, D), jnp.float32)],
        ),
        compiler_params=pltpu.CompilerParams(
            dimension_semantics=("parallel", "arbitrary"),
            vmem_limit_bytes=int(cap * 0.9)),
    )(x_embed, prompt_key_norm)


# ----------------------------------------------------------------------------
# Scalar-prefetch prompt gather:  prompt[:, idx]  ->  (L, B, K, length, D).
# idx lives in SMEM; only the selected (length, D) rows are DMA'd from HBM.
# ----------------------------------------------------------------------------
def _gather_kernel(idx_ref, prompt_ref, out_ref):
    del idx_ref  # used only inside the index_maps
    out_ref[...] = prompt_ref[...].reshape(out_ref.shape)


def _gather_prompts_call(prompt, idx):
    L, P, length, D = prompt.shape
    B, K = idx.shape
    gathered = pl.pallas_call(
        _gather_kernel,
        out_shape=jax.ShapeDtypeStruct((L, B, K, length, D), prompt.dtype),
        grid_spec=pltpu.PrefetchScalarGridSpec(
            num_scalar_prefetch=1,
            grid=(L, B, K),
            in_specs=[
                pl.BlockSpec((1, 1, length, D),
                             lambda l, b, k, idx_ref: (l, idx_ref[b, k], 0, 0)),
            ],
            out_specs=pl.BlockSpec((1, 1, 1, length, D),
                                   lambda l, b, k, idx_ref: (l, b, k, 0, 0)),
        ),
        compiler_params=pltpu.CompilerParams(
            dimension_semantics=("parallel", "parallel", "arbitrary")),
    )(idx.astype(jnp.int32), prompt)
    # Contiguous reshape (free) to match torch's .reshape(L, B, K*length, D).
    return gathered.reshape(L, B, K * length, D)


# ----------------------------------------------------------------------------
# Forward pass (prompt_pool=True, prompt_key=True, embedding_key='mean',
# use_prefix_tune_for_e_prompt=False, batchwise_prompt=False).
# ----------------------------------------------------------------------------
def sprompt_forward(x_embed, prompt, prompt_key, *, top_k, prompt_mask=None):
    out = {}
    batch_size = x_embed.shape[0]

    # Tiny (P, D) key normalization in plain JAX (fuses; no extra kernel launch),
    # then the batch/seq-tiled hot path.
    prompt_key_norm = _l2_normalize(prompt_key)
    similarity, x_embed_norm = _similarity_call(x_embed, prompt_key_norm)
    out['similarity'] = similarity

    # Top-k only when no prompt_mask is supplied (mask path skips the sort).
    # TODO(synk): batchwise_prompt unique/bincount path not implemented (config off).
    if prompt_mask is not None:
        idx = prompt_mask.astype(jnp.int32)
    else:
        _, idx = jax.lax.top_k(similarity, top_k)                  # (B, K)
    out['prompt_idx'] = idx

    # Pallas scalar-prefetch gather of the selected prompt rows.
    batched_prompt = _gather_prompts_call(prompt, idx)             # (L, B, K*len, D)

    # Selected (normalized) keys — tiny gather, plain JAX.
    batched_key_norm = prompt_key_norm[idx]                        # (B, K, D)
    out['selected_key'] = batched_key_norm
    out['prompt_key_norm'] = prompt_key_norm
    out['x_embed_norm'] = x_embed_norm

    # reduce_sim = sum(selected_key_norm * x_norm[:,None,:]) / B
    #            = sum_b sum_k similarity[b, idx[b,k]] / B   (exact identity).
    gathered_sim = jnp.take_along_axis(similarity, idx, axis=1)    # (B, K)
    out['reduce_sim'] = jnp.sum(gathered_sim) / jnp.float32(batch_size)

    out['batched_prompt'] = batched_prompt
    return out


# ----------------------------------------------------------------------------
# Pure-JAX reference (mirrors the PyTorch code) for a sanity check.
# ----------------------------------------------------------------------------
def _reference_forward(x_embed, prompt, prompt_key, top_k):
    def l2n(v):
        ss = jnp.sum(v * v, axis=-1, keepdims=True)
        return v * lax.rsqrt(jnp.maximum(ss, 1e-12))

    x_mean = jnp.mean(x_embed, axis=1)
    kn = l2n(prompt_key)
    xn = l2n(x_mean)
    sim = (kn @ xn.T).T
    _, idx = jax.lax.top_k(sim, top_k)
    braw = jnp.take(prompt, idx, axis=1)
    L, B, K, Ln, D = braw.shape
    bp = braw.reshape(L, B, K * Ln, D)
    bkn = kn[idx]
    rsim = jnp.sum(bkn * xn[:, None, :]) / x_mean.shape[0]
    return sim, idx, bp, bkn, rsim


if __name__ == "__main__":
    # Small, forward-consistent shapes.
    B, S, D = 2, 8, 32
    num_layers, pool_size, length, top_k = 1, 8, 5, 2

    key = jax.random.PRNGKey(0)
    kx, kp, kk = jax.random.split(key, 3)

    x_embed = jax.random.normal(kx, (B, S, D), dtype=jnp.float32)
    # prompt_init='uniform' -> U(-1, 1); prompt_key_init='uniform' -> U(-1, 1)
    prompt = jax.random.uniform(kp, (num_layers, pool_size, length, D),
                                dtype=jnp.float32, minval=-1.0, maxval=1.0)
    prompt_key = jax.random.uniform(kk, (pool_size, D),
                                    dtype=jnp.float32, minval=-1.0, maxval=1.0)

    out = sprompt_forward(x_embed, prompt, prompt_key, top_k=top_k)
    out = jax.block_until_ready(out)

    # Sanity check vs. plain-JAX reference.
    ref_sim, ref_idx, ref_bp, ref_bkn, ref_rsim = _reference_forward(
        x_embed, prompt, prompt_key, top_k)
    assert jnp.allclose(out['similarity'], ref_sim, atol=1e-5)
    assert jnp.array_equal(out['prompt_idx'], ref_idx)
    assert jnp.allclose(out['batched_prompt'], ref_bp, atol=1e-5)
    assert jnp.allclose(out['selected_key'], ref_bkn, atol=1e-5)
    assert jnp.allclose(out['reduce_sim'], ref_rsim, atol=1e-5)
    assert out['batched_prompt'].shape == (num_layers, B, top_k * length, D)

    print("KERNEL_OK")
</pallas_src>

<mosaic_0001>
module attributes {stable_mosaic.version = 11 : i64} {
  func.func @_similarity_kernel(%arg0: i32, %arg1: i32, %arg2: memref<2x8x32xf32, #tpu.memory_space<vmem>>, %arg3: memref<8x32xf32, #tpu.memory_space<vmem>>, %arg4: memref<2x8xf32, #tpu.memory_space<vmem>>, %arg5: memref<2x32xf32, #tpu.memory_space<vmem>>, %arg6: memref<2x32xf32, #tpu.memory_space<vmem>>) attributes {dimension_semantics = [#tpu.dimension_semantics<parallel>, #tpu.dimension_semantics<arbitrary>], iteration_bounds = array<i64: 1, 1>, scalar_prefetch = 0 : i64, scratch_operands = 1 : i64, tpu.core_type = #tpu.core_type<tc>, window_params = [{transform_indices = @transform_0, window_bounds = array<i64: 2, 8, 32>}, {pipeline_mode = #tpu.pipeline_mode<synchronous>, transform_indices = @transform_1, window_bounds = array<i64: 8, 32>}, {transform_indices = @transform_2, window_bounds = array<i64: 2, 8>}, {transform_indices = @transform_3, window_bounds = array<i64: 2, 32>}]} {
    %c0_i32 = arith.constant 0 : i32
    %0 = arith.cmpi eq, %arg1, %c0_i32 : i32
    %1 = arith.extui %0 : i1 to i32
    %c0_i32_0 = arith.constant 0 : i32
    %2 = arith.cmpi ne, %1, %c0_i32_0 : i32
    scf.if %2 {
      %cst_9 = arith.constant 0.000000e+00 : f32
      %11 = vector.broadcast %cst_9 : f32 to vector<2x32xf32>
      %c0_10 = arith.constant 0 : index
      %c0_11 = arith.constant 0 : index
      %12 = vector.load %arg6[%c0_10, %c0_11] : memref<2x32xf32, #tpu.memory_space<vmem>>, vector<2x32xf32>
      tpu.vector_store %arg6[%c0_10, %c0_11], %11 {strides = array<i32>} : memref<2x32xf32, #tpu.memory_space<vmem>>, vector<2x32xf32>,
    } else {
    }
    %c0 = arith.constant 0 : index
    %c0_1 = arith.constant 0 : index
    %c0_2 = arith.constant 0 : index
    %3 = vector.load %arg2[%c0, %c0_1, %c0_2] : memref<2x8x32xf32, #tpu.memory_space<vmem>>, vector<2x8x32xf32>
    %c0_3 = arith.constant 0 : index
    %c0_4 = arith.constant 0 : index
    %4 = vector.load %arg6[%c0_3, %c0_4] : memref<2x32xf32, #tpu.memory_space<vmem>>, vector<2x32xf32>
    %cst = arith.constant dense<0.000000e+00> : vector<2x32xf32>
    %5 = vector.multi_reduction <add>, %3, %cst [1] : vector<2x8x32xf32> to vector<2x32xf32>
    %6 = arith.addf %4, %5 : vector<2x32xf32>
    %c0_5 = arith.constant 0 : index
    %c0_6 = arith.constant 0 : index
    %7 = vector.load %arg6[%c0_5, %c0_6] : memref<2x32xf32, #tpu.memory_space<vmem>>, vector<2x32xf32>
    tpu.vector_store %arg6[%c0_5, %c0_6], %6 {strides = array<i32>} : memref<2x32xf32, #tpu.memory_space<vmem>>, vector<2x32xf32>,
    %c0_i32_7 = arith.constant 0 : i32
    %8 = arith.cmpi eq, %arg1, %c0_i32_7 : i32
    %9 = arith.extui %8 : i1 to i32
    %c0_i32_8 = arith.constant 0 : i32
    %10 = arith.cmpi ne, %9, %c0_i32_8 : i32
    scf.if %10 {
      %c0_9 = arith.constant 0 : index
      %c0_10 = arith.constant 0 : index
      %11 = vector.load %arg6[%c0_9, %c0_10] : memref<2x32xf32, #tpu.memory_space<vmem>>, vector<2x32xf32>
      %cst_11 = arith.constant 1.250000e-01 : f32
      %12 = vector.broadcast %cst_11 : f32 to vector<2x32xf32>
      %13 = arith.mulf %11, %12 : vector<2x32xf32>
      %14 = arith.mulf %13, %13 : vector<2x32xf32>
      %cst_12 = arith.constant dense<0.000000e+00> : vector<2xf32>
      %15 = vector.multi_reduction <add>, %14, %cst_12 [1] : vector<2x32xf32> to vector<2xf32>
      %16 = vector.shape_cast %15 : vector<2xf32> to vector<2x1xf32>
      %cst_13 = arith.constant 9.99999996E-13 : f32
      %17 = vector.broadcast %cst_13 : f32 to vector<2x1xf32>
      %18 = arith.maximumf %16, %17 : vector<2x1xf32>
      %19 = math.rsqrt %18 : vector<2x1xf32>
      %20 = vector.broadcast %19 : vector<2x1xf32> to vector<2x32xf32>
      %21 = arith.mulf %13, %20 : vector<2x32xf32>
      %c0_14 = arith.constant 0 : index
      %c0_15 = arith.constant 0 : index
      %22 = vector.load %arg3[%c0_14, %c0_15] : memref<8x32xf32, #tpu.memory_space<vmem>>, vector<8x32xf32>
      %cst_16 = arith.constant dense<0.000000e+00> : vector<2x8xf32>
      %23 = tpu.matmul %21, %22, %cst_16 {dimension_numbers = #tpu.dot_dimension_numbers<[1], [1], [0], [0], [0, 0, 1, 0], [], []>} : vector<2x32xf32>, vector<8x32xf32>, vector<2x8xf32> -> vector<2x8xf32>
      %c0_17 = arith.constant 0 : index
      %c0_18 = arith.constant 0 : index
      %24 = vector.load %arg4[%c0_17, %c0_18] : memref<2x8xf32, #tpu.memory_space<vmem>>, vector<2x8xf32>
      tpu.vector_store %arg4[%c0_17, %c0_18], %23 {strides = array<i32>} : memref<2x8xf32, #tpu.memory_space<vmem>>, vector<2x8xf32>,
      %c0_19 = arith.constant 0 : index
      %c0_20 = arith.constant 0 : index
      %25 = vector.load %arg5[%c0_19, %c0_20] : memref<2x32xf32, #tpu.memory_space<vmem>>, vector<2x32xf32>
      tpu.vector_store %arg5[%c0_19, %c0_20], %21 {strides = array<i32>} : memref<2x32xf32, #tpu.memory_space<vmem>>, vector<2x32xf32>,
    } else {
    }
    return
  }
  func.func @transform_0(%arg0: i32, %arg1: i32) -> (i32, i32, i32) {
    %c0_i32 = arith.constant 0 : i32
    %c0_i32_0 = arith.constant 0 : i32
    return %arg0, %arg1, %c0_i32 : i32, i32, i32
  }
  func.func @transform_1(%arg0: i32, %arg1: i32) -> (i32, i32) {
    %c0_i32 = arith.constant 0 : i32
    %c0_i32_0 = arith.constant 0 : i32
    %c0_i32_1 = arith.constant 0 : i32
    return %c0_i32, %c0_i32_0 : i32, i32
  }
  func.func @transform_2(%arg0: i32, %arg1: i32) -> (i32, i32) {
    %c0_i32 = arith.constant 0 : i32
    %c0_i32_0 = arith.constant 0 : i32
    return %arg0, %c0_i32 : i32, i32
  }
  func.func @transform_3(%arg0: i32, %arg1: i32) -> (i32, i32) {
    %c0_i32 = arith.constant 0 : i32
    %c0_i32_0 = arith.constant 0 : i32
    return %arg0, %c0_i32 : i32, i32
  }
}

</mosaic_0001>

<bundles_post_ra>
// kernel: tpu_custom_call.1
= control target key start
LH: loop header
LB: loop body
LE: loop exit
PB: predicated region body
PF: predicated region fallthrough
CT: control target
= control target key end

     0   :  { %9 = vsyncpa [#allocation4], 0  ;;  %s350_s0 = inlined_call_operand.hbm [shape: f32[2,8,32], index: 0, kind: input, shape index: {}]   ;;  %s351_s1 = inlined_call_operand.hbm [shape: f32[8,32], index: 1, kind: input, shape index: {}]   ;;  %s352_s2 = inlined_call_operand.hbm [shape: f32[2,8], index: 2, kind: output, shape index: {0}]   ;;  %s353_s3 = inlined_call_operand.hbm [shape: f32[2,32], index: 3, kind: output, shape index: {1}]  }
   0x1   :  { %10 = vsyncpa [#allocation7], 0 }
   0x2   :  { %11 = vsyncpa [#allocation5], 0 }
   0x3   :  { %12 = vsyncpa [#allocation10], 0  ;;  %s302_s12 = smov [#allocation3]  }
   0x4   :  { %s18_s13 = sshll.u32 %s302_s12, 4  ;;  %s19_s13 = int_to_ptr.vmem [resolvable:$true] %s18_s13 }
   0x5   :  { %s222_s14 = scalar_lea.vmem %s19_s13, 256  ;;  %p227_p1 = scmp.lt.s32.totalorder %s19_s13, %s19_s13 }
   0x6   :  { %p223_p0 = scmp.ne.s32.totalorder %s19_s13, %s222_s14  ;;  %p228_p2 = scmp.lt.s32.totalorder %s222_s14, %s222_s14 }
   0x8   :  { %p229_p3 = por %p228_p2, %p227_p1 }
   0xa   :  { %p230_p4 = pnand %p229_p3, %p223_p0 }
   0xc   :  { %233 = shalt.err (!%p230_p4)
}
   0xd   :  { %s303_s15 = smov 128   ;;  %s304_s16 = smov 8  }
   0xe   :  { %24 = dma.hbm_to_vmem [thread:$0]  %s350_s0, 256, %s19_s13, [#allocation4], %s303_s15, %s303_s15, %s304_s16  }
   0xf   :  { %s305_s19 = smov [#allocation6]  }
  0x10   :  { %s31_s20 = sshll.u32 %s305_s19, 4  ;;  %s32_s20 = int_to_ptr.vmem [resolvable:$true] %s31_s20 }
  0x11   :  { %s242_s21 = scalar_lea.vmem %s32_s20, 128  ;;  %p247_p6 = scmp.lt.s32.totalorder %s32_s20, %s32_s20 }
  0x12   :  { %p243_p5 = scmp.ne.s32.totalorder %s32_s20, %s242_s21  ;;  %p248_p7 = scmp.lt.s32.totalorder %s242_s21, %s242_s21 }
  0x14   :  { %p249_p8 = por %p248_p7, %p247_p6 }
  0x16   :  { %p250_p9 = pnand %p249_p8, %p243_p5 }
  0x18   :  { %253 = shalt.err (!%p250_p9)
}
  0x19   :  { %34 = dma.hbm_to_vmem [thread:$0]  %s351_s1, 128, %s32_s20, [#allocation7]  }
  0x1a   :  { %294 = dma.done.wait [#allocation4], 256  }
  0x1b   :  { %295 = vsyncadd [#allocation4], 4294967040 }
  0x1c   :  { %296 = dma.done.wait [#allocation7], 128  }
  0x1d   :  { %297 = vsyncadd [#allocation7], 4294967168  ;;  %vm45_vm0 = vcmask 254976   ;;  %v306_v0 = vmov 0.0   ;;  %vm50_vm1 = vcmask 261120   ;;  %v47_v1 = vld [vmem:[#allocation3] sm:$0xff] }
  0x1e   :  { %46 = vst.msk [vmem:[#allocation2] sm:$0x3] %vm45_vm0, %v306_v0  ;;  %199 = vmatprep.subr.mxu0 %v306_v0  ;;  %v48_v2 = vld [vmem:[#allocation3 + $0x8] sm:$0xff]  ;;  %v51_v3 = vsel %vm50_vm1, %v47_v1, 0.0  ;;  %vm67_vm2 = vcmask 1041409   ;;  %v85_v24 = vld [vmem:[#allocation6] sm:$0xff] }
  0x1f   :  { %v58_v4 = vsel %vm50_vm1, %v48_v2, 0.0  ;;  %v52_v5 = vrot.slane %v51_v3, 4  ;;  %200 = vmatpush3.xpose.msk.msra.mxu0 %vm50_vm1, %v85_v24  ;;  %vm307_vm3 = vmmov 0   ;;  %s308_s0 = smov [#allocation9]  }
  0x20   :  { %v59_v6 = vrot.slane %v58_v4, 4  ;;  %201 = vmatprep.mubr.msk.f32.mxu0 %vm307_vm3, %v306_v0  ;;  %s181_s1 = sshll.u32 %s308_s0, 4  ;;  %s182_s1 = int_to_ptr.vmem [resolvable:$true] %s181_s1 }
  0x21   :  { %v53_v7 = vadd.f32 %v52_v5, %v51_v3  ;;  %s254_s24 = scalar_lea.vmem %s182_s1, 32  ;;  %p259_p11 = scmp.lt.s32.totalorder %s182_s1, %s182_s1 }
  0x22   :  { %v60_v8 = vadd.f32 %v59_v6, %v58_v4  ;;  %p255_p10 = scmp.ne.s32.totalorder %s182_s1, %s254_s24  ;;  %p260_p12 = scmp.lt.s32.totalorder %s254_s24, %s254_s24 }
  0x23   :  { %v54_v9 = vrot.slane %v53_v7, 2 }
  0x24   :  { %v61_v10 = vrot.slane %v60_v8, 2  ;;  %p261_p13 = por %p260_p12, %p259_p11 }
  0x25   :  { %v55_v11 = vadd.f32 %v54_v9, %v53_v7  ;;  %v49_v15 = vld [vmem:[#allocation2] sm:$0x3] }
  0x26   :  { %v62_v12 = vadd.f32 %v61_v10, %v60_v8  ;;  %p262_p0 = pnand %p261_p13, %p255_p10 }
  0x27   :  { %v56_v13 = vrot.slane %v55_v11, 1 }
  0x28   :  { %v63_v14 = vrot.slane %v62_v12, 1 }
  0x29   :  { %v57_v16 = vadd.f32 %v56_v13, %v55_v11 }
  0x2a   :  { %v64_v17 = vadd.f32 %v63_v14, %v62_v12 }
  0x2c   :  { %v68_v18 = vsel %vm67_vm2, %v64_v17, %v57_v16 }
  0x2d   :  { %v70_v19 = vadd.f32 %v68_v18, %v49_v15 }
  0x2f   :  { %72 = vst.msk [vmem:[#allocation2] sm:$0x3] %vm45_vm0, %v70_v19 }
  0x36   :  { %v76_v20 = vld [vmem:[#allocation2] sm:$0x3] }
  0x37   :  { %v77_v21 = vmul.f32 0.125, %v76_v20 }
  0x39   :  { %v78_v22 = vmul.f32 %v77_v21, %v77_v21 }
  0x3b   :  { %v79_v23 = vsel %vm45_vm0, %v78_v22, 0.0 }
  0x3c   :  { %80 = vadd.xlane.f32.xlu0 %v79_v23 }
  0xc5   :  { %v81_v25 = vpop.xlane.xlu0 %80 }
  0xc6   :  { %v82_v26 = vmax.f32 %v81_v25, 1e-12 }
  0xc8   :  { %212 = vrsqrt.f32 %v82_v26 }
  0xd5   :  { %v213_v27 = vpop.eup %212 }
  0xd6   :  { %v84_v28 = vmul.f32 %v213_v27, %v77_v21 }
  0xd8   :  { %202 = vmatmul.mubr.msk.f32.vlgmr.msra.gmra.mxu0 %vm50_vm1, %v84_v28  ;;  %164 = vst.msk [vmem:[#allocation9] sm:$0x3] %vm45_vm0, %v84_v28 }
  0xd9   :  { %265 = shalt.err (!%p262_p0)
}
  0xda   :  { %184 = dma.vmem_to_hbm [thread:$0]  %s182_s1, 32, %s353_s3, [#allocation10]   ;;  %vm162_vm4 = vcmask 58368  }
  0xdb   :  { %s309_s27 = smov [#allocation8]  }
  0xdc   :  { %s171_s28 = sshll.u32 %s309_s27, 4  ;;  %s172_s28 = int_to_ptr.vmem [resolvable:$true] %s171_s28 }
  0xdd   :  { %s274_s29 = scalar_lea.vmem %s172_s28, 32  ;;  %p279_p2 = scmp.lt.s32.totalorder %s172_s28, %s172_s28 }
  0xde   :  { %p275_p1 = scmp.ne.s32.totalorder %s172_s28, %s274_s29  ;;  %p280_p3 = scmp.lt.s32.totalorder %s274_s29, %s274_s29 }
  0xe0   :  { %p281_p4 = por %p280_p3, %p279_p2 }
  0xe2   :  { %p282_p5 = pnand %p281_p4, %p275_p1 }
 0x198   :  { %v158_v29 = vpop.f32.mrf.mxu0 }
 0x199   :  { %163 = vst.msk [vmem:[#allocation8] sm:$0x3] %vm162_vm4, %v158_v29 }
 0x19a   :  { %v203_v30 = vpop.f32.mrf.mxu0 }
 0x19b   :  { %285 = shalt.err (!%p282_p5)
}
 0x19c   :  { %174 = dma.vmem_to_hbm [thread:$0]  %s172_s28, 32, %s352_s2, [#allocation5]  }
 0x19d   :  { %298 = dma.done.wait [#allocation5], 32  }
 0x19e   :  { %299 = vsyncadd [#allocation5], 4294967264 }
 0x19f   :  { %300 = dma.done.wait [#allocation10], 32  }
 0x1a0   :  { %301 = vsyncadd [#allocation10], 4294967264 }
 0x1a1   :  { %191 = vsyncpa [#allocation4], 1 }
 0x1a2   :  { %192 = vsyncpa [#allocation7], 1 }
 0x1a3   :  { %193 = vsyncpa [#allocation5], 1 }
 0x1a4   :  { %194 = vsyncpa [#allocation10], 1 }

</bundles_post_ra>
